<compile_context>
chip_gen: v6e
topology: v6e:2x2x1
jax: 0.10.0
libtpu: 0.0.40
codegen_flags: <defaults>
</compile_context>

<pallas_src>
import functools
import math

import jax
import jax.numpy as jnp
from jax.experimental import pallas as pl
from jax.experimental.pallas import tpu as pltpu

_NEG_INF = -1e30  # finite mask sentinel: avoids inf - inf = NaN on partially masked rows


def _layernorm(x, alpha, beta, eps):
    # Matches the PyTorch LayerNormalization: unbiased std (ddof=1), eps added to
    # std (not to variance). Kept in float32.
    mean = jnp.mean(x, axis=-1, keepdims=True)
    var = jnp.sum((x - mean) ** 2, axis=-1, keepdims=True) / (x.shape[-1] - 1)
    std = jnp.sqrt(var)
    return alpha * ((x - mean) / (std + eps)) + beta


# ------------------------- kernel A: LN1 + Q/K/V projection -------------------------
def qkv_proj_kernel(x_ref, ln_a_ref, ln_b_ref, wq_ref, wk_ref, wv_ref,
                    q_ref, k_ref, v_ref, *, eps):
    h = _layernorm(x_ref[0], ln_a_ref[...], ln_b_ref[...], eps)
    hc = h.astype(wq_ref.dtype)
    q_ref[0] = jnp.dot(hc, wq_ref[...],
                       preferred_element_type=jnp.float32).astype(q_ref.dtype)
    k_ref[0] = jnp.dot(hc, wk_ref[...],
                       preferred_element_type=jnp.float32).astype(k_ref.dtype)
    v_ref[0] = jnp.dot(hc, wv_ref[...],
                       preferred_element_type=jnp.float32).astype(v_ref.dtype)


# --------------- kernel B: flash attention + output projection + residual ------------
def attn_kernel(flags_ref,                      # scalar-prefetch: per-block validity
                x_ref, q_ref, k_ref, v_ref, mask_ref, wo_ref,
                o_ref,
                m_sc, l_sc, acc_sc, *, n_heads, scale):
    b, qi, ki = pl.program_id(0), pl.program_id(1), pl.program_id(2)
    n_q, n_kv = pl.num_programs(1), pl.num_programs(2)
    bq, emb = q_ref.shape[1], q_ref.shape[2]
    dh = emb // n_heads
    cd = q_ref.dtype                            # MXU compute dtype (bf16)

    @pl.when(ki == 0)
    def _init():
        m_sc[...] = jnp.full_like(m_sc, _NEG_INF)
        l_sc[...] = jnp.zeros_like(l_sc)
        acc_sc[...] = jnp.zeros_like(acc_sc)

    # Skip KV blocks that are fully masked for this whole q-block (padding).
    blk_valid = flags_ref[(b * n_q + qi) * n_kv + ki] != 0

    @pl.when(blk_valid)
    def _compute():
        valid = mask_ref[0, 0] != 0             # (bq, bkv), shared across heads
        # TODO(synk): pack heads when dh < 128 so score/PV contractions are >=128 wide.
        for hh in range(n_heads):
            lo = hh * dh
            qh = q_ref[0, :, lo:lo + dh]        # static ref slices (no value re-layout)
            kh = k_ref[0, :, lo:lo + dh]
            vh = v_ref[0, :, lo:lo + dh]
            s = jax.lax.dot_general(qh, kh, (((1,), (1,)), ((), ())),
                                    preferred_element_type=jnp.float32) * scale
            s = jnp.where(valid, s, _NEG_INF)
            m_prev = m_sc[:, lo:lo + 1]                                  # (bq,1)
            m_new = jnp.maximum(m_prev, jnp.max(s, axis=-1, keepdims=True))
            alpha = jnp.exp(m_prev - m_new)                              # (bq,1)
            p = jnp.exp(s - m_new)                                       # (bq,bkv)
            l_sc[:, lo:lo + dh] = (alpha * l_sc[:, lo:lo + dh]
                                   + jnp.sum(p, axis=-1, keepdims=True))
            acc_sc[:, lo:lo + dh] = (alpha * acc_sc[:, lo:lo + dh]
                                     + jnp.dot(p.astype(cd), vh,
                                               preferred_element_type=jnp.float32))
            m_sc[:, lo:lo + dh] = jnp.broadcast_to(m_new, (bq, dh))

    @pl.when(ki == n_kv - 1)
    def _finalize():
        # l_sc is replicated across each head's dh lanes -> full-width normalize.
        attn = acc_sc[...] * pl.reciprocal(l_sc[...], approx=True)       # (bq, E) f32
        attn_out = jnp.dot(attn.astype(cd), wo_ref[...],
                           preferred_element_type=jnp.float32)
        # TODO(synk): dropout (on attn scores / after sublayers) is identity in eval mode.
        o_ref[0] = (x_ref[0] + attn_out).astype(o_ref.dtype)


# -------------------------- kernel C: LN2 + FFN + residual ---------------------------
def ffn_kernel(x_ref, ln_a_ref, ln_b_ref, w1_ref, b1_ref, w2_ref, b2_ref,
               o_ref, *, eps):
    x = x_ref[0]
    h = _layernorm(x, ln_a_ref[...], ln_b_ref[...], eps)
    cd = w1_ref.dtype
    f = jnp.dot(h.astype(cd), w1_ref[...],
                preferred_element_type=jnp.float32) + b1_ref[...]
    f = jnp.maximum(f, 0.0)
    f = jnp.dot(f.astype(cd), w2_ref[...],
                preferred_element_type=jnp.float32) + b2_ref[...]
    o_ref[0] = (x + f).astype(o_ref.dtype)


# ------------------------------------ wrapper ----------------------------------------
def _vmem_capacity_bytes():
    try:
        cap = getattr(pltpu.get_tpu_info(), "vmem_capacity_bytes", None)
        if cap:
            return int(cap)
    except Exception:
        pass
    return 64 << 20        # conservative default (v7x-sized)


def _vmem_limit(nbytes, cap):
    hi = max(32 << 20, min(cap - (8 << 20), 100 << 20))   # keep ~8 MiB headroom
    return int(min(max(nbytes, 32 << 20), hi))


def encoder_block(x, mask, params, *, n_heads, eps=1e-6,
                  block_q=None, block_kv=None, block_rows=None,
                  compute_dtype=jnp.bfloat16, out_dtype=None):
    B, S, E = x.shape
    d_ff = params["w1_t"].shape[1]
    assert E % n_heads == 0
    dh = E // n_heads
    out_dtype = out_dtype or x.dtype
    if mask is None:
        mask = jnp.ones((B, 1, S, S), jnp.float32)

    # Chip-aware tile / VMEM defaults: bigger tiles on 128-MiB parts (v5e/v6e).
    cap = _vmem_capacity_bytes()
    big_vmem = cap >= (100 << 20)
    if block_q is None:
        block_q = min(S, 512 if big_vmem else 256)
    if block_kv is None:
        block_kv = min(S, 1024 if big_vmem else 512)
    if block_rows is None:
        block_rows = min(S, 1024 if big_vmem else 512)
    assert S % block_q == 0 and S % block_kv == 0 and S % block_rows == 0
    n_q, n_kv, n_r = S // block_q, S // block_kv, S // block_rows

    cd = compute_dtype
    isz = jnp.dtype(cd).itemsize
    osz = jnp.dtype(out_dtype).itemsize
    f32 = 4

    # Weights in compute dtype (halves DMA bytes + VMEM residency); LN params and
    # biases stay f32.
    wq = params["wq_t"].astype(cd)
    wk = params["wk_t"].astype(cd)
    wv = params["wv_t"].astype(cd)
    wo = params["wo_t"].astype(cd)
    w1 = params["w1_t"].astype(cd)
    w2 = params["w2_t"].astype(cd)

    # int8 mask (head-shared, shape (B,1,S,S)) + per-(b, q-block, kv-block) validity
    # flags used to pl.when-skip fully masked KV tiles.
    mask_i8 = (mask != 0).astype(jnp.int8)
    flags = mask_i8[:, 0].reshape(B, n_q, block_q, n_kv, block_kv)
    flags = jnp.any(flags != 0, axis=(2, 4)).astype(jnp.int32).reshape(-1)

    # ---------------- kernel A: LN1 + Q/K/V projections (once per row) ----------------
    a_bytes = (2 * (3 * E * E * isz + 2 * E * f32
                    + block_rows * E * f32 + 3 * block_rows * E * isz)
               + 2 * block_rows * E * f32 + (4 << 20))
    q, k, v = pl.pallas_call(
        functools.partial(qkv_proj_kernel, eps=eps),
        out_shape=tuple(jax.ShapeDtypeStruct((B, S, E), cd) for _ in range(3)),
        grid=(B, n_r),
        in_specs=[
            pl.BlockSpec((1, block_rows, E), lambda b, r: (b, r, 0)),
            pl.BlockSpec((1, E), lambda b, r: (0, 0)),
            pl.BlockSpec((1, E), lambda b, r: (0, 0)),
            pl.BlockSpec((E, E), lambda b, r: (0, 0)),
            pl.BlockSpec((E, E), lambda b, r: (0, 0)),
            pl.BlockSpec((E, E), lambda b, r: (0, 0)),
        ],
        out_specs=tuple(pl.BlockSpec((1, block_rows, E), lambda b, r: (b, r, 0))
                        for _ in range(3)),
        compiler_params=pltpu.CompilerParams(
            dimension_semantics=("parallel", "parallel"),
            vmem_limit_bytes=_vmem_limit(a_bytes, cap)),
    )(x, params["ln1_a"], params["ln1_b"], wq, wk, wv)

    # ------------- kernel B: flash attention + W_o projection + residual -------------
    b_bytes = (2 * (E * E * isz
                    + block_q * E * (f32 + isz)
                    + 2 * block_kv * E * isz
                    + block_q * block_kv
                    + block_q * E * f32)
               + 3 * block_q * E * f32
               + 2 * block_q * block_kv * f32 + block_q * E * f32 + (4 << 20))
    x1 = pl.pallas_call(
        functools.partial(attn_kernel, n_heads=n_heads, scale=1.0 / math.sqrt(dh)),
        out_shape=jax.ShapeDtypeStruct((B, S, E), jnp.float32),
        grid_spec=pltpu.PrefetchScalarGridSpec(
            num_scalar_prefetch=1,
            grid=(B, n_q, n_kv),
            in_specs=[
                pl.BlockSpec((1, block_q, E), lambda b, qi, ki, f: (b, qi, 0)),   # x (residual)
                pl.BlockSpec((1, block_q, E), lambda b, qi, ki, f: (b, qi, 0)),   # q
                pl.BlockSpec((1, block_kv, E), lambda b, qi, ki, f: (b, ki, 0)),  # k
                pl.BlockSpec((1, block_kv, E), lambda b, qi, ki, f: (b, ki, 0)),  # v
                pl.BlockSpec((1, 1, block_q, block_kv),
                             lambda b, qi, ki, f: (b, 0, qi, ki)),                # mask int8
                pl.BlockSpec((E, E), lambda b, qi, ki, f: (0, 0)),                # wo
            ],
            out_specs=pl.BlockSpec((1, block_q, E), lambda b, qi, ki, f: (b, qi, 0)),
            scratch_shapes=[
                pltpu.VMEM((block_q, E), jnp.float32),   # running max  (lane-dense slab)
                pltpu.VMEM((block_q, E), jnp.float32),   # running denom (lane-dense slab)
                pltpu.VMEM((block_q, E), jnp.float32),   # PV accumulator slab
            ]),
        compiler_params=pltpu.CompilerParams(
            dimension_semantics=("parallel", "parallel", "arbitrary"),
            vmem_limit_bytes=_vmem_limit(b_bytes, cap)),
    )(flags, x, q, k, v, mask_i8, wo)

    # -------------------------- kernel C: LN2 + FFN + residual ------------------------
    c_bytes = (2 * (2 * E * d_ff * isz + (d_ff + 3 * E) * f32
                    + block_rows * E * f32 + block_rows * E * osz)
               + block_rows * d_ff * f32 + block_rows * E * f32 + (4 << 20))
    out = pl.pallas_call(
        functools.partial(ffn_kernel, eps=eps),
        out_shape=jax.ShapeDtypeStruct((B, S, E), out_dtype),
        grid=(B, n_r),
        in_specs=[
            pl.BlockSpec((1, block_rows, E), lambda b, r: (b, r, 0)),
            pl.BlockSpec((1, E), lambda b, r: (0, 0)),
            pl.BlockSpec((1, E), lambda b, r: (0, 0)),
            pl.BlockSpec((E, d_ff), lambda b, r: (0, 0)),
            pl.BlockSpec((1, d_ff), lambda b, r: (0, 0)),
            pl.BlockSpec((d_ff, E), lambda b, r: (0, 0)),
            pl.BlockSpec((1, E), lambda b, r: (0, 0)),
        ],
        out_specs=pl.BlockSpec((1, block_rows, E), lambda b, r: (b, r, 0)),
        compiler_params=pltpu.CompilerParams(
            dimension_semantics=("parallel", "parallel"),
            vmem_limit_bytes=_vmem_limit(c_bytes, cap)),
    )(x1, params["ln2_a"], params["ln2_b"], w1, params["b1"], w2, params["b2"])
    return out


# ---------------------------- pure-JAX f32 reference ---------------------------------
def encoder_block_reference(x, mask, params, *, n_heads, eps=1e-6):
    """Pure-JAX f32 reference matching the PyTorch forward (eval mode)."""
    def ln(x, a, b):
        mean = x.mean(-1, keepdims=True)
        var = jnp.sum((x - mean) ** 2, -1, keepdims=True) / (x.shape[-1] - 1)
        return a * ((x - mean) / (jnp.sqrt(var) + eps)) + b

    B, S, E = x.shape
    dh = E // n_heads
    h = ln(x, params["ln1_a"], params["ln1_b"])
    q = (h @ params["wq_t"]).reshape(B, S, n_heads, dh).transpose(0, 2, 1, 3)
    k = (h @ params["wk_t"]).reshape(B, S, n_heads, dh).transpose(0, 2, 1, 3)
    v = (h @ params["wv_t"]).reshape(B, S, n_heads, dh).transpose(0, 2, 1, 3)
    s = jnp.einsum("bhqd,bhkd->bhqk", q, k) / math.sqrt(dh)
    s = jnp.where(mask == 0, -jnp.inf, s)
    p = jax.nn.softmax(s, axis=-1)
    o = jnp.einsum("bhqk,bhkd->bhqd", p, v).transpose(0, 2, 1, 3).reshape(B, S, E)
    x = x + o @ params["wo_t"]
    h2 = ln(x, params["ln2_a"], params["ln2_b"])
    f = jnp.maximum(h2 @ params["w1_t"] + params["b1"], 0.0)
    f = f @ params["w2_t"] + params["b2"]
    return x + f


def init_params(key, embed_dim, d_ff):
    ks = jax.random.split(key, 8)
    u = lambda k, shape, fan_in: jax.random.uniform(
        k, shape, jnp.float32, -1.0 / math.sqrt(fan_in), 1.0 / math.sqrt(fan_in))
    return {
        # nn.Linear weights are (out,in); we store them pre-transposed (in,out).
        "wq_t": u(ks[0], (embed_dim, embed_dim), embed_dim),
        "wk_t": u(ks[1], (embed_dim, embed_dim), embed_dim),
        "wv_t": u(ks[2], (embed_dim, embed_dim), embed_dim),
        "wo_t": u(ks[3], (embed_dim, embed_dim), embed_dim),
        "w1_t": u(ks[4], (embed_dim, d_ff), embed_dim),
        "b1":   u(ks[5], (1, d_ff), embed_dim),
        "w2_t": u(ks[6], (d_ff, embed_dim), d_ff),
        "b2":   u(ks[7], (1, embed_dim), d_ff),
        "ln1_a": jnp.ones((1, embed_dim), jnp.float32),
        "ln1_b": jnp.zeros((1, embed_dim), jnp.float32),
        "ln2_a": jnp.ones((1, embed_dim), jnp.float32),
        "ln2_b": jnp.zeros((1, embed_dim), jnp.float32),
    }


if __name__ == "__main__":
    B, S, E, H, D_FF = 2, 8, 32, 4, 64

    key = jax.random.PRNGKey(0)
    kx, kp = jax.random.split(key)
    x = jax.random.normal(kx, (B, S, E), jnp.float32)
    params = init_params(kp, E, D_FF)

    # src_mask: [B, 1, S, S], 1 = attend, 0 = masked. Batch 0 attends all 8 keys,
    # batch 1 only the first 6 (padding mask).
    valid_len = jnp.array([S, S - 2], jnp.int32)
    key_idx = jnp.arange(S)[None, None, None, :]
    mask = (key_idx < valid_len[:, None, None, None]).astype(jnp.float32)
    mask = jnp.broadcast_to(mask, (B, 1, S, S))

    out = encoder_block(x, mask, params, n_heads=H)
    out = jax.block_until_ready(out)

    ref = encoder_block_reference(x, mask, params, n_heads=H)
    assert out.shape == (B, S, E)
    assert bool(jnp.all(jnp.isfinite(out)))
    # MXU inputs are bf16 (f32 accumulation), so compare at bf16-level tolerance.
    assert bool(jnp.allclose(out, ref, rtol=2e-2, atol=2e-2))
    print("KERNEL_OK")
</pallas_src>

<mosaic_0001>
module attributes {stable_mosaic.version = 11 : i64} {
  func.func @qkv_proj_kernel(%arg0: i32, %arg1: i32, %arg2: memref<1x8x32xf32, #tpu.memory_space<vmem>>, %arg3: memref<1x32xf32, #tpu.memory_space<vmem>>, %arg4: memref<1x32xf32, #tpu.memory_space<vmem>>, %arg5: memref<32x32xbf16, #tpu.memory_space<vmem>>, %arg6: memref<32x32xbf16, #tpu.memory_space<vmem>>, %arg7: memref<32x32xbf16, #tpu.memory_space<vmem>>, %arg8: memref<1x8x32xbf16, #tpu.memory_space<vmem>>, %arg9: memref<1x8x32xbf16, #tpu.memory_space<vmem>>, %arg10: memref<1x8x32xbf16, #tpu.memory_space<vmem>>) attributes {dimension_semantics = [#tpu.dimension_semantics<parallel>, #tpu.dimension_semantics<parallel>], iteration_bounds = array<i64: 2, 1>, scalar_prefetch = 0 : i64, scratch_operands = 0 : i64, tpu.core_type = #tpu.core_type<tc>, window_params = [{transform_indices = @transform_0, window_bounds = array<i64: 1, 8, 32>}, {pipeline_mode = #tpu.pipeline_mode<synchronous>, transform_indices = @transform_1, window_bounds = array<i64: 1, 32>}, {pipeline_mode = #tpu.pipeline_mode<synchronous>, transform_indices = @transform_2, window_bounds = array<i64: 1, 32>}, {pipeline_mode = #tpu.pipeline_mode<synchronous>, transform_indices = @transform_3, window_bounds = array<i64: 32, 32>}, {pipeline_mode = #tpu.pipeline_mode<synchronous>, transform_indices = @transform_4, window_bounds = array<i64: 32, 32>}, {pipeline_mode = #tpu.pipeline_mode<synchronous>, transform_indices = @transform_5, window_bounds = array<i64: 32, 32>}, {transform_indices = @transform_6, window_bounds = array<i64: 1, 8, 32>}, {transform_indices = @transform_7, window_bounds = array<i64: 1, 8, 32>}, {transform_indices = @transform_8, window_bounds = array<i64: 1, 8, 32>}]} {
    %c0 = arith.constant 0 : index
    %c0_0 = arith.constant 0 : index
    %c0_1 = arith.constant 0 : index
    %0 = vector.load %arg2[%c0, %c0_0, %c0_1] : memref<1x8x32xf32, #tpu.memory_space<vmem>>, vector<1x8x32xf32>
    %1 = vector.shape_cast %0 : vector<1x8x32xf32> to vector<8x32xf32>
    %c0_2 = arith.constant 0 : index
    %c0_3 = arith.constant 0 : index
    %2 = vector.load %arg3[%c0_2, %c0_3] : memref<1x32xf32, #tpu.memory_space<vmem>>, vector<1x32xf32>
    %c0_4 = arith.constant 0 : index
    %c0_5 = arith.constant 0 : index
    %3 = vector.load %arg4[%c0_4, %c0_5] : memref<1x32xf32, #tpu.memory_space<vmem>>, vector<1x32xf32>
    %cst = arith.constant dense<0.000000e+00> : vector<8xf32>
    %4 = vector.multi_reduction <add>, %1, %cst [1] : vector<8x32xf32> to vector<8xf32>
    %5 = vector.shape_cast %4 : vector<8xf32> to vector<8x1xf32>
    %cst_6 = arith.constant 3.200000e+01 : f32
    %6 = vector.broadcast %cst_6 : f32 to vector<8x1xf32>
    %7 = arith.divf %5, %6 : vector<8x1xf32>
    %8 = vector.broadcast %7 : vector<8x1xf32> to vector<8x32xf32>
    %9 = arith.subf %1, %8 : vector<8x32xf32>
    %10 = arith.mulf %9, %9 : vector<8x32xf32>
    %cst_7 = arith.constant dense<0.000000e+00> : vector<8xf32>
    %11 = vector.multi_reduction <add>, %10, %cst_7 [1] : vector<8x32xf32> to vector<8xf32>
    %12 = vector.shape_cast %11 : vector<8xf32> to vector<8x1xf32>
    %cst_8 = arith.constant 3.100000e+01 : f32
    %13 = vector.broadcast %cst_8 : f32 to vector<8x1xf32>
    %14 = arith.divf %12, %13 : vector<8x1xf32>
    %15 = math.sqrt %14 : vector<8x1xf32>
    %16 = vector.broadcast %7 : vector<8x1xf32> to vector<8x32xf32>
    %17 = arith.subf %1, %16 : vector<8x32xf32>
    %cst_9 = arith.constant 9.99999997E-7 : f32
    %18 = vector.broadcast %cst_9 : f32 to vector<8x1xf32>
    %19 = arith.addf %15, %18 : vector<8x1xf32>
    %20 = vector.broadcast %19 : vector<8x1xf32> to vector<8x32xf32>
    %21 = arith.divf %17, %20 : vector<8x32xf32>
    %22 = vector.broadcast %2 : vector<1x32xf32> to vector<8x32xf32>
    %23 = arith.mulf %22, %21 : vector<8x32xf32>
    %24 = vector.broadcast %3 : vector<1x32xf32> to vector<8x32xf32>
    %25 = arith.addf %23, %24 : vector<8x32xf32>
    %26 = arith.truncf %25 : vector<8x32xf32> to vector<8x32xbf16>
    %c0_10 = arith.constant 0 : index
    %c0_11 = arith.constant 0 : index
    %27 = vector.load %arg5[%c0_10, %c0_11] : memref<32x32xbf16, #tpu.memory_space<vmem>>, vector<32x32xbf16>
    %cst_12 = arith.constant dense<0.000000e+00> : vector<8x32xf32>
    %28 = tpu.matmul %26, %27, %cst_12 {dimension_numbers = #tpu.dot_dimension_numbers<[1], [0], [0], [1], [0, 0, 1, 1], [], []>} : vector<8x32xbf16>, vector<32x32xbf16>, vector<8x32xf32> -> vector<8x32xf32>
    %29 = arith.truncf %28 : vector<8x32xf32> to vector<8x32xbf16>
    %c0_13 = arith.constant 0 : index
    %c0_14 = arith.constant 0 : index
    %c0_15 = arith.constant 0 : index
    %30 = vector.load %arg8[%c0_13, %c0_14, %c0_15] : memref<1x8x32xbf16, #tpu.memory_space<vmem>>, vector<1x8x32xbf16>
    %31 = vector.shape_cast %30 : vector<1x8x32xbf16> to vector<8x32xbf16>
    %32 = vector.shape_cast %29 : vector<8x32xbf16> to vector<1x8x32xbf16>
    tpu.vector_store %arg8[%c0_13, %c0_14, %c0_15], %32 {strides = array<i32>} : memref<1x8x32xbf16, #tpu.memory_space<vmem>>, vector<1x8x32xbf16>,
    %c0_16 = arith.constant 0 : index
    %c0_17 = arith.constant 0 : index
    %33 = vector.load %arg6[%c0_16, %c0_17] : memref<32x32xbf16, #tpu.memory_space<vmem>>, vector<32x32xbf16>
    %cst_18 = arith.constant dense<0.000000e+00> : vector<8x32xf32>
    %34 = tpu.matmul %26, %33, %cst_18 {dimension_numbers = #tpu.dot_dimension_numbers<[1], [0], [0], [1], [0, 0, 1, 1], [], []>} : vector<8x32xbf16>, vector<32x32xbf16>, vector<8x32xf32> -> vector<8x32xf32>
    %35 = arith.truncf %34 : vector<8x32xf32> to vector<8x32xbf16>
    %c0_19 = arith.constant 0 : index
    %c0_20 = arith.constant 0 : index
    %c0_21 = arith.constant 0 : index
    %36 = vector.load %arg9[%c0_19, %c0_20, %c0_21] : memref<1x8x32xbf16, #tpu.memory_space<vmem>>, vector<1x8x32xbf16>
    %37 = vector.shape_cast %36 : vector<1x8x32xbf16> to vector<8x32xbf16>
    %38 = vector.shape_cast %35 : vector<8x32xbf16> to vector<1x8x32xbf16>
    tpu.vector_store %arg9[%c0_19, %c0_20, %c0_21], %38 {strides = array<i32>} : memref<1x8x32xbf16, #tpu.memory_space<vmem>>, vector<1x8x32xbf16>,
    %c0_22 = arith.constant 0 : index
    %c0_23 = arith.constant 0 : index
    %39 = vector.load %arg7[%c0_22, %c0_23] : memref<32x32xbf16, #tpu.memory_space<vmem>>, vector<32x32xbf16>
    %cst_24 = arith.constant dense<0.000000e+00> : vector<8x32xf32>
    %40 = tpu.matmul %26, %39, %cst_24 {dimension_numbers = #tpu.dot_dimension_numbers<[1], [0], [0], [1], [0, 0, 1, 1], [], []>} : vector<8x32xbf16>, vector<32x32xbf16>, vector<8x32xf32> -> vector<8x32xf32>
    %41 = arith.truncf %40 : vector<8x32xf32> to vector<8x32xbf16>
    %c0_25 = arith.constant 0 : index
    %c0_26 = arith.constant 0 : index
    %c0_27 = arith.constant 0 : index
    %42 = vector.load %arg10[%c0_25, %c0_26, %c0_27] : memref<1x8x32xbf16, #tpu.memory_space<vmem>>, vector<1x8x32xbf16>
    %43 = vector.shape_cast %42 : vector<1x8x32xbf16> to vector<8x32xbf16>
    %44 = vector.shape_cast %41 : vector<8x32xbf16> to vector<1x8x32xbf16>
    tpu.vector_store %arg10[%c0_25, %c0_26, %c0_27], %44 {strides = array<i32>} : memref<1x8x32xbf16, #tpu.memory_space<vmem>>, vector<1x8x32xbf16>,
    return
  }
  func.func @transform_0(%arg0: i32, %arg1: i32) -> (i32, i32, i32) {
    %c0_i32 = arith.constant 0 : i32
    %c0_i32_0 = arith.constant 0 : i32
    return %arg0, %arg1, %c0_i32 : i32, i32, i32
  }
  func.func @transform_1(%arg0: i32, %arg1: i32) -> (i32, i32) {
    %c0_i32 = arith.constant 0 : i32
    %c0_i32_0 = arith.constant 0 : i32
    %c0_i32_1 = arith.constant 0 : i32
    return %c0_i32, %c0_i32_0 : i32, i32
  }
  func.func @transform_2(%arg0: i32, %arg1: i32) -> (i32, i32) {
    %c0_i32 = arith.constant 0 : i32
    %c0_i32_0 = arith.constant 0 : i32
    %c0_i32_1 = arith.constant 0 : i32
    return %c0_i32, %c0_i32_0 : i32, i32
  }
  func.func @transform_3(%arg0: i32, %arg1: i32) -> (i32, i32) {
    %c0_i32 = arith.constant 0 : i32
    %c0_i32_0 = arith.constant 0 : i32
    %c0_i32_1 = arith.constant 0 : i32
    return %c0_i32, %c0_i32_0 : i32, i32
  }
  func.func @transform_4(%arg0: i32, %arg1: i32) -> (i32, i32) {
    %c0_i32 = arith.constant 0 : i32
    %c0_i32_0 = arith.constant 0 : i32
    %c0_i32_1 = arith.constant 0 : i32
    return %c0_i32, %c0_i32_0 : i32, i32
  }
  func.func @transform_5(%arg0: i32, %arg1: i32) -> (i32, i32) {
    %c0_i32 = arith.constant 0 : i32
    %c0_i32_0 = arith.constant 0 : i32
    %c0_i32_1 = arith.constant 0 : i32
    return %c0_i32, %c0_i32_0 : i32, i32
  }
  func.func @transform_6(%arg0: i32, %arg1: i32) -> (i32, i32, i32) {
    %c0_i32 = arith.constant 0 : i32
    %c0_i32_0 = arith.constant 0 : i32
    return %arg0, %arg1, %c0_i32 : i32, i32, i32
  }
  func.func @transform_7(%arg0: i32, %arg1: i32) -> (i32, i32, i32) {
    %c0_i32 = arith.constant 0 : i32
    %c0_i32_0 = arith.constant 0 : i32
    return %arg0, %arg1, %c0_i32 : i32, i32, i32
  }
  func.func @transform_8(%arg0: i32, %arg1: i32) -> (i32, i32, i32) {
    %c0_i32 = arith.constant 0 : i32
    %c0_i32_0 = arith.constant 0 : i32
    return %arg0, %arg1, %c0_i32 : i32, i32, i32
  }
}

</mosaic_0001>

<bundles_post_ra>
// kernel: tpu_custom_call.1
= control target key start
LH: loop header
LB: loop body
LE: loop exit
PB: predicated region body
PF: predicated region fallthrough
CT: control target
= control target key end

     0   :  { %s1622_s0 = inlined_call_operand.hbm [shape: f32[2,8,32], index: 0, kind: input, shape index: {}]   ;;  %s1623_s1 = inlined_call_operand.vmem [shape: f32[1,32], index: 1, kind: input, shape index: {}]   ;;  %s1624_s2 = inlined_call_operand.vmem [shape: f32[1,32], index: 2, kind: input, shape index: {}]   ;;  %s1625_s3 = inlined_call_operand.hbm [shape: bf16[32,32], index: 3, kind: input, shape index: {}]   ;;  %s1626_s4 = inlined_call_operand.hbm [shape: bf16[32,32], index: 4, kind: input, shape index: {}]   ;;  %s1627_s5 = inlined_call_operand.hbm [shape: bf16[32,32], index: 5, kind: input, shape index: {}]   ;;  %s1628_s6 = inlined_call_operand.hbm [shape: bf16[2,8,32], index: 6, kind: output, shape index: {0}]   ;;  %s1629_s7 = inlined_call_operand.hbm [shape: bf16[2,8,32], index: 7, kind: output, shape index: {1}]   ;;  %s1630_s8 = inlined_call_operand.hbm [shape: bf16[2,8,32], index: 8, kind: output, shape index: {2}]  }
   0x1   :  { %1635 = sst [smem:[#allocation20_spill]] %s1625_s3 }
   0x2   :  { %1636 = sst [smem:[#allocation21_spill]] %s1626_s4 }
   0x3   :  { %1637 = sst [smem:[#allocation22_spill]] %s1627_s5 }
   0x4   :  { %14 = vsyncpa [#allocation3], 0 }
   0x5   :  { %16 = vsyncpa [#allocation3 + $0x1], 0 }
   0x6   :  { %17 = vsyncpa [#allocation6], 0 }
   0x7   :  { %18 = vsyncpa [#allocation9], 0 }
   0x8   :  { %19 = vsyncpa [#allocation4], 0 }
   0x9   :  { %21 = vsyncpa [#allocation4 + $0x1], 0 }
   0xa   :  { %22 = vsyncpa [#allocation12], 0 }
   0xb   :  { %24 = vsyncpa [#allocation12 + $0x1], 0  ;;  %s1343_s27 = smov 0   ;;  %s1345_s28 = smov 0  }
   0xc   :  { %s1347_s29 = smov 0   ;;  %s1349_s30 = smov 0  }
   0xd   :  { %s1351_s9 = smov 0   ;;  %s1353_s10 = smov 0  }
   0xe LB: > { %s1374_s11 = sadd.s32 4294967295, %s1285_s10   ;;  %s1633_s12 = sadd.s32 4294967294, %s1285_s10   ;;  %s1285_s10 = sphi %s1353_s10, %s30_s10   ;;  %s1281_s9 = sphi %s1351_s9, %s1662_s9   ;;  %s1277_s30 = sphi %s1349_s30, %s1661_s30   ;;  %s1273_s29 = sphi %s1347_s29, %s1660_s29   ;;  %s1269_s28 = sphi %s1345_s28, %s1659_s28   ;;  %s1265_s27 = sphi %s1343_s27, %s1658_s27  }
   0xf   : > { %p64_p0 = scmp.ne.s32.totalorder %s1269_s28, %s1265_s27  ;;  %p1631_p1 = scmp.eq.s32.totalorder %s1374_s11, 0 }
  0x10   : > { %p201_p3 = scmp.eq.s32.totalorder %s1633_s12, 1  ;;  %p851_p5 = scmp.ge.s32.totalorder %s1285_s10, 1 }
  0x11   : > { %p1385_p4 = por %p1631_p1, %p64_p0  ;;  %p264_p7 = scmp.lt.s32.totalorder %s1285_s10, 3 }
  0x12   : > { %p1390_p6 = por %p201_p3, %p64_p0  ;;  %s1287_s16 = smov [#allocation5]  }
  0x13   : > { %s1638_s13 = scalar_select %p1385_p4, 1, 0 }
  0x14   : > { %s1639_s14 = scalar_select %p1390_p6, 1, 0 }
  0x15   : > { %p1395_p8 = pnand %p851_p5, %p264_p7  ;;  %s282_s17 = sshll.u32 %s1287_s16, 4  ;;  %s283_s17 = int_to_ptr.vmem [resolvable:$true] %s282_s17 }
  0x16   : > { %s1288_s19 = smov [#allocation7]   ;;  %s1289_s21 = smov [#allocation8]  }
  0x17   : > { %p938_p9 = pneg %p1395_p8  ;;  %s295_s20 = sshll.u32 %s1288_s19, 4  ;;  %s296_s20 = int_to_ptr.vmem [resolvable:$true] %s295_s20 }
  0x18   : > { %s308_s22 = sshll.u32 %s1289_s21, 4  ;;  %s1046_s23 = scalar_lea.vmem %s283_s17, 256  ;;  %s309_s22 = int_to_ptr.vmem [resolvable:$true] %s308_s22 }
  0x19   : > { %p1404_p11 = pnand %p938_p9, %p1631_p1  ;;  %p1047_p13 = scmp.ne.s32.totalorder %s283_s17, %s1046_s23 }
  0x1a   : > { %p1054_p5 = scmp.lt.s32.totalorder %s283_s17, %s283_s17  ;;  %p1055_p7 = scmp.lt.s32.totalorder %s1046_s23, %s1046_s23 }
  0x1b   : > { %p1037_p12 = pneg %p1404_p11 }
  0x1c   : > { %p1056_p9 = por %p1055_p7, %p1054_p5 }
  0x1d   : > { %p1049_p0 = pnand %p1047_p13, %p1037_p12 }
  0x1f   : > { %p1050_p3 = pneg %p1049_p0 }
  0x21   : > { %p1057_p10 = pnand %p1056_p9, %p1050_p3 }
  0x23   : > { %1060 = shalt.err (!%p1057_p10)
}
  0x24   : > { %s1290_s24 = smov 64   ;;  %s1291_s25 = smov 4  }
  0x25   : > { %s1642_s3 = sld [smem:[#allocation20_spill]]  ;;  %s1072_s19 = scalar_lea.vmem %s296_s20, 256 }
  0x26   : > { %p1073_p1 = scmp.ne.s32.totalorder %s296_s20, %s1072_s19  ;;  %p1080_p2 = scmp.lt.s32.totalorder %s296_s20, %s296_s20 }
  0x27   : > { %p1081_p6 = scmp.lt.s32.totalorder %s1072_s19, %s1072_s19 }
  0x28   : > { %p1075_p13 = pnand %p1073_p1, %p1037_p12 }
  0x29   : > { %p1082_p5 = por %p1081_p6, %p1080_p2 }
  0x2a   : > { %p1076_p0 = pneg %p1075_p13 }
  0x2b   : > { %941 = dma.hbm_to_vmem [thread:$0]  (!%p1404_p11), %s1642_s3, 256, %s283_s17, [#allocation6], %s1290_s24, %s1290_s24, %s1291_s25  }
  0x2c   : > { %p1083_p3 = pnand %p1082_p5, %p1076_p0 }
  0x2e   : > { %1086 = shalt.err (!%p1083_p3)
}
  0x2f   : > { %s1643_s4 = sld [smem:[#allocation21_spill]]  ;;  %s1098_s17 = scalar_lea.vmem %s309_s22, 256 }
  0x30   : > { %p1099_p10 = scmp.ne.s32.totalorder %s309_s22, %s1098_s17  ;;  %p1106_p9 = scmp.lt.s32.totalorder %s309_s22, %s309_s22 }
  0x31   : > { %p1107_p13 = scmp.lt.s32.totalorder %s1098_s17, %s1098_s17 }
  0x32   : > { %p1101_p7 = pnand %p1099_p10, %p1037_p12 }
  0x33   : > { %p1108_p4 = por %p1107_p13, %p1106_p9 }
  0x34   : > { %p1102_p1 = pneg %p1101_p7 }
  0x35   : > { %944 = dma.hbm_to_vmem [thread:$0]  (!%p1404_p11), %s1643_s4, 256, %s296_s20, [#allocation6], %s1290_s24, %s1290_s24, %s1291_s25  }
  0x36   : > { %p1109_p2 = pnand %p1108_p4, %p1102_p1 }
  0x38   : > { %1112 = shalt.err (!%p1109_p2)
}
  0x39   : > { %s1644_s5 = sld [smem:[#allocation22_spill]]  ;;  %s51_s20 = sadd.s32 1, %s1273_s29 }
  0x3a   : > { %s42_s19 = sadd.s32 1, %s1281_s9  ;;  %p58_p4 = scmp.ne.s32.totalorder %s1273_s29, %s1269_s28 }
  0x3b   : > { %p44_p6 = scmp.ge.s32.totalorder %s42_s19, 2  ;;  %p59_p12 = scmp.eq.s32.totalorder %s1285_s10, 0 }
  0x3c   : > { %p1645_p0 = scmp.eq.s32.totalorder %s1374_s11, 1  ;;  %p965_p3 = scmp.lt.s32.totalorder %s1285_s10, 2 }
  0x3d   : > { %s1664_s19 = smov (%p44_p6, %s42_s19), 0  ;;  %p60_p10 = por %p59_p12, %p58_p4 }
  0x3e   : > { %p1441_p5 = por %p1645_p0, %p58_p4  ;;  %1647 = sst [smem:[#allocation19_spill]] %s1664_s19 }
  0x3f   : > { %947 = dma.hbm_to_vmem [thread:$0]  (!%p1404_p11), %s1644_s5, 256, %s309_s22, [#allocation9], %s1290_s24, %s1290_s24, %s1291_s25  }
  0x40   : > { %s322_s21 = sand.u32 1, %s1273_s29   ;;  %s46_s23 = ssub.s32 %s1281_s9, %s1664_s19 }
  0x41   : > { %p49_p7 = scmp.eq.s32.totalorder %s46_s23, 0  ;;  %s856_s22 = sshll.u32 %s322_s21, 3 }
  0x42   : > { %s857_s24 = sshll.u32 %s1281_s9, 7  ;;  %s326_s12 = scalar_lea.vmem [#allocation2], %s856_s22 }
  0x43   : > { %s1453_s25 = scalar_select %p49_p7, %s1273_s29, %s51_s20  }
  0x44   : > { %s332_s16 = scalar_lea.hbm %s1622_s0, %s857_s24  ;;  %s334_s3 = sshll.u32 %s326_s12, 4  ;;  %s335_s3 = int_to_ptr.vmem [resolvable:$true] %s334_s3 }
  0x45   : > { %p1460_p11 = pnand %p965_p3, %p60_p10  ;;  %s323_s5 = scalar_lea.sflag [#allocation3], %s322_s21 }
  0x46   : > { %s1126_s23 = scalar_lea.vmem %s335_s3, 128  ;;  %s1292_s20 = smov [#allocation2]  }
  0x47   : > { %p1115_p1 = pneg %p1460_p11  ;;  %p1127_p9 = scmp.ne.s32.totalorder %s335_s3, %s1126_s23 }
  0x48   : > { %s1131_s19 = sshll.u32 %s1292_s20, 4  ;;  %s1132_s19 = int_to_ptr.vmem [resolvable:$false] %s1131_s19 }
  0x49   : > { %p1129_p13 = pnand %p1127_p9, %p1115_p1  ;;  %s1133_s24 = scalar_lea.vmem %s1132_s19, 256 }
  0x4a   : > { %p1134_p4 = scmp.lt.s32.totalorder %s335_s3, %s1132_s19  ;;  %p1135_p6 = scmp.lt.s32.totalorder %s1133_s24, %s1126_s23 }
  0x4b   : > { %p1130_p2 = pneg %p1129_p13 }
  0x4c   : > { %p1136_p12 = por %p1135_p6, %p1134_p4 }
  0x4e   : > { %p1137_p0 = pnand %p1136_p12, %p1130_p2 }
  0x50   : > { %1140 = shalt.err (!%p1137_p0)
}
  0x51   : > { %951 = dma.hbm_to_vmem [thread:$0]  (!%p1460_p11), %s332_s16, 128, %s335_s3, %s323_s5  }
  0x52   : > { %343 = sbr.rel (%p1395_p8) target bundleno = 678 (0x2a6), region = 44  ;;  %s1471_s12 = sand.u32 (!%p1395_p8), 1, %s1269_s28  }
  0x53   : > { %s859_s21 = sshll.u32 (!%p1395_p8), %s1471_s12, 3  ;;  %s346_s22 = scalar_lea.sflag (!%p1395_p8), [#allocation3], %s1471_s12 }
  0x54   : > { %s349_s17 = scalar_lea.vmem (!%p1395_p8), [#allocation2], %s859_s21  ;;  %p1649_p3 = scmp.ne.s32.totalorder (!%p1395_p8), %s1638_s13, 0 }
  0x57   : > { %1244 = dma.done.wait (%p1649_p3), %s346_s22, 128  }
  0x58   : > { %1246 = vsyncadd (%p1649_p3), %s346_s22, 4294967168  ;;  %p1650_p10 = scmp.eq.s32.totalorder %s1374_s11, 0 }
  0x5a   : > { %1248 = dma.done.wait (%p1650_p10), [#allocation6], 512   ;;  %p1651_p7 = pmov %p1650_p10 }
  0x5c   : > { %1250 = vsyncadd (%p1651_p7), [#allocation6], 4294966784  ;;  %p1652_p8 = pmov %p1651_p7 }
  0x5d   : > { %p1653_p11 = pmov %p1651_p7 }
  0x5e   : > { %1252 = dma.done.wait (%p1652_p8), [#allocation9], 256  }
  0x5f   : > { %1254 = vsyncadd (%p1653_p11), [#allocation9], 4294967040  ;;  %vm408_vm0 = vcmask 261120   ;;  %v405_v0 = vld [vmem:[%s349_s17] sm:$0xff]  ;;  %v1025_v7 = vld [vmem:[#allocation5 + $0x8] sm:$0xff]   ;;  %v1293_v9 = vmov 0.0  }
  0x60   : > { %v409_v1 = vsel %vm408_vm0, %v405_v0, 0.0  ;;  %v1026_v8 = vld [vmem:[#allocation7 + $0x8] sm:$0xff]   ;;  %894 = vmatprep.subr.bf16.mxu0 %v1293_v9  ;;  %902 = vmatprep.subr.bf16.mxu1 %v1293_v9  ;;  %v1027_v10 = vld [vmem:[#allocation5] sm:$0xff]   ;;  %v1028_v11 = vld [vmem:[#allocation7] sm:$0xff]   ;;  %vm1294_vm1 = vmmov 0   ;;  %s1502_s15 = sshll.u32 %s1471_s12, 2 }
  0x61   : > { %410 = vadd.xlane.f32.xlu0 %v409_v1  ;;  %895 = vmatpush3.bf16.msra.mxu0 %v1025_v7  ;;  %v866_v21 = vld [vmem:[%s1623_s1] ss:$0 sm:$0xff]  ;;  %v1029_v26 = vld [vmem:[#allocation8 + $0x8] sm:$0xff]   ;;  %v1030_v28 = vld [vmem:[#allocation8] sm:$0xff]   ;;  %s629_s19 = sand.u32 1, %s1374_s11   ;;  %s1506_s26 = sshll.u32 %s1277_s30, 6 }
  0x62   : > { %903 = vmatpush3.bf16.msra.mxu1 %v1026_v8  ;;  %896 = vmatprep.subr.bf16.mxu0 %v1293_v9  ;;  %v867_v23 = vld [vmem:[%s1624_s2] ss:$0 sm:$0xff]  ;;  %s396_s16 = scalar_lea.vmem [#allocation11], %s1502_s15  ;;  %s389_s20 = scalar_lea.vmem [#allocation10], %s1502_s15  ;;  %vm506_vm4 = vcmask 257024  }
  0x63   : > { %904 = vmatprep.subr.bf16.mxu1 %v1293_v9  ;;  %898 = vmatprep.mubr.msk.bf16.mxu0 %vm1294_vm1, %v1293_v9  ;;  %s663_s23 = sshll.u32 %s396_s16, 4  ;;  %s649_s24 = sshll.u32 %s389_s20, 4  ;;  %s1516_s23 = int_to_ptr.vmem [resolvable:$true] %s663_s23  ;;  %s1524_s24 = int_to_ptr.vmem [resolvable:$true] %s649_s24 }
  0x64   : > { %906 = vmatprep.mubr.msk.bf16.mxu1 %vm1294_vm1, %v1293_v9  ;;  %s1514_s17 = scalar_lea.hbm %s1629_s7, %s1506_s26  ;;  %s1522_s3 = scalar_lea.hbm %s1628_s6, %s1506_s26 }
  0x65   : > { %897 = vmatpush3.bf16.msra.mxu0 %v1027_v10  ;;  %s1528_s4 = scalar_lea.sflag [#allocation12], %s629_s19  ;;  %s1141_s5 = scalar_lea.vmem %s1516_s23, 64 }
  0x66   : > { %905 = vmatpush3.bf16.msra.mxu1 %v1028_v11  ;;  %910 = vmatprep.subr.bf16.mxu0 %v1293_v9  ;;  %p1142_p1 = scmp.ne.s32.totalorder %s1516_s23, %s1141_s5  ;;  %s1295_s13 = smov [#allocation11]  }
  0x67   : > { %s1145_s21 = sshll.u32 %s1295_s13, 4  ;;  %s1146_s21 = int_to_ptr.vmem [resolvable:$false] %s1145_s21 }
  0x68   : > { %p1143_p9 = pnand %p1142_p1, %p1441_p5  ;;  %s1147_s22 = scalar_lea.vmem %s1146_s21, 128 }
  0x69   : > { %p1148_p2 = scmp.lt.s32.totalorder %s1516_s23, %s1146_s21  ;;  %p1149_p4 = scmp.lt.s32.totalorder %s1147_s22, %s1141_s5 }
  0x6a   : > { %p1144_p13 = pneg %p1143_p9 }
  0x6b   : > { %p1150_p6 = por %p1149_p4, %p1148_p2 }
  0x6d   : > { %p1151_p12 = pnand %p1150_p6, %p1144_p13 }
  0xea   : > { %v411_v2 = vpop.xlane.xlu0 %410 }
  0xeb   : > { %v413_v3 = vmul.f32 0.03125, %v411_v2 }
  0xed   : > { %v414_v4 = vsub.f32 %v405_v0, %v413_v3 }
  0xef   : > { %v415_v5 = vmul.f32 %v414_v4, %v414_v4 }
  0xf1   : > { %v416_v6 = vsel %vm408_vm0, %v415_v5, 0.0 }
  0xf2   : > { %417 = vadd.xlane.f32.xlu0 %v416_v6 }
 0x17b   : > { %v418_v12 = vpop.xlane.xlu0 %417 }
 0x17c   : > { %v420_v13 = vmul.f32 0.032258064, %v418_v12 }
 0x17e   : > { %1031 = vrsqrt.f32 %v420_v13  ;;  %vm423_vm2 = vcmp.eq.f32.partialorder %v420_v13, inf  ;;  %v426_v16 = vand.u32 2147483648, %v420_v13  ;;  %vm425_vm3 = vcmp.eq.f32.partialorder %v420_v13, 0.0 }
 0x18b   : > { %v1032_v14 = vpop.eup %1031 }
 0x18c   : > { %v422_v15 = vmul.f32 %v1032_v14, %v420_v13 }
 0x18e   : > { %v424_v17 = vsel %vm423_vm2, %v420_v13, %v422_v15 }
 0x18f   : > { %v427_v18 = vsel %vm425_vm3, %v426_v16, %v424_v17 }
 0x190   : > { %v428_v19 = vadd.f32 1e-06, %v427_v18 }
 0x192   : > { %1033 = vrcp.f32 %v428_v19 }
 0x19f   : > { %v1034_v20 = vpop.eup %1033 }
 0x1a0   : > { %v430_v22 = vmul.f32 %v1034_v20, %v414_v4 }
 0x1a2   : > { %v437_v24 = vmul.f32 %v866_v21, %v430_v22 }
 0x1a4   : > { %v444_v25 = vadd.f32 %v867_v23, %v437_v24 }
 0x1a6   : > { %v445_v27 = vpack.c.bf16 %v444_v25, %v444_v25 }
 0x1a8   : > { %899 = vmatmul.mubr.msk.bf16.vlgmr.msra.gmra.mxu0 %vm408_vm0, %v445_v27  ;;  %907 = vmatmul.mubr.msk.bf16.vlgmr.msra.gmra.mxu1 %vm408_vm0, %v445_v27 }
 0x1a9   : > { %911 = vmatpush3.bf16.msra.mxu0 %v1029_v26  ;;  %914 = vmatprep.mubr.msk.bf16.mxu0 %vm1294_vm1, %v1293_v9 }
 0x1aa   : > { %912 = vmatprep.subr.bf16.mxu0 %v1293_v9 }
 0x1ad   : > { %913 = vmatpush3.bf16.msra.mxu0 %v1030_v28 }
 0x1b0   : > { %915 = vmatmul.mubr.msk.bf16.vlgmr.msra.gmra.mxu0 %vm408_vm0, %v445_v27 }
 0x268   : > { %v499_v29 = vpop.f32.mrf.mxu0  ;;  %v558_v30 = vpop.f32.mrf.mxu1 }
 0x269   : > { %v505_v31 = vpack.c.bf16 %v499_v29, %v499_v29  ;;  %v564_v32 = vpack.c.bf16 %v558_v30, %v558_v30 }
 0x26a   : > { %v900_v33 = vpop.f32.mrf.mxu0  ;;  %v908_v34 = vpop.f32.mrf.mxu1 }
 0x26b   : > { %565 = vst.msk [vmem:[%s396_s16] sm:$0xf] %vm506_vm4, %v564_v32  ;;  %507 = vst.msk [vmem:[%s389_s20] sm:$0xf] %vm506_vm4, %v505_v31 }
 0x26c   : > { %v502_v35 = vpop.f32.mrf.mxu0  ;;  %v561_v36 = vpop.f32.mrf.mxu1 }
 0x26d   : > { %1154 = shalt.err (!%p1151_p12)
}
 0x26e   : > { %s1155_s19 = scalar_lea.hbm %s1514_s17, 64  ;;  %s1159_s30 = scalar_lea.hbm %s1629_s7, 128 }
 0x26f   : > { %p1156_p0 = scmp.ne.s32.totalorder %s1514_s17, %s1155_s19  ;;  %p1160_p7 = scmp.lt.s32.totalorder %s1514_s17, %s1629_s7 }
 0x270   : > { %p1161_p8 = scmp.lt.s32.totalorder %s1159_s30, %s1155_s19 }
 0x271   : > { %p1157_p3 = pnand %p1156_p0, %p1441_p5 }
 0x272   : > { %p1162_p11 = por %p1161_p8, %p1160_p7 }
 0x273   : > { %p1158_p10 = pneg %p1157_p3 }
 0x275   : > { %p1163_p1 = pnand %p1162_p11, %p1158_p10 }
 0x277   : > { %1166 = shalt.err (!%p1163_p1)
}
 0x278   : > { %933 = dma.vmem_to_hbm [thread:$0]  (%p1441_p5), %s1516_s23, 64, %s1514_s17, %s1528_s4  }
 0x279   : > { %s625_s5 = scalar_lea.sflag [#allocation4], %s1471_s12  ;;  %s1167_s21 = scalar_lea.vmem %s1524_s24, 64 }
 0x27a   : > { %p1168_p9 = scmp.ne.s32.totalorder %s1524_s24, %s1167_s21  ;;  %s1296_s22 = smov [#allocation10]  }
 0x27b   : > { %s1171_s19 = sshll.u32 %s1296_s22, 4  ;;  %s1172_s19 = int_to_ptr.vmem [resolvable:$false] %s1171_s19 }
 0x27c   : > { %p1169_p13 = pnand %p1168_p9, %p1441_p5  ;;  %s1173_s16 = scalar_lea.vmem %s1172_s19, 128 }
 0x27d   : > { %p1174_p4 = scmp.lt.s32.totalorder %s1524_s24, %s1172_s19  ;;  %p1175_p6 = scmp.lt.s32.totalorder %s1173_s16, %s1167_s21 }
 0x27e   : > { %p1170_p2 = pneg %p1169_p13 }
 0x27f   : > { %p1176_p12 = por %p1175_p6, %p1174_p4 }
 0x281   : > { %p1177_p0 = pnand %p1176_p12, %p1170_p2 }
 0x283   : > { %1180 = shalt.err (!%p1177_p0)
}
 0x284   : > { %s1181_s23 = scalar_lea.hbm %s1522_s3, 64  ;;  %s1185_s20 = scalar_lea.hbm %s1628_s6, 128 }
 0x285   : > { %p1182_p3 = scmp.ne.s32.totalorder %s1522_s3, %s1181_s23  ;;  %p1186_p8 = scmp.lt.s32.totalorder %s1522_s3, %s1628_s6 }
 0x286   : > { %p1187_p11 = scmp.lt.s32.totalorder %s1185_s20, %s1181_s23 }
 0x287   : > { %p1183_p10 = pnand %p1182_p3, %p1441_p5 }
 0x288   : > { %p1188_p1 = por %p1187_p11, %p1186_p8 }
 0x289   : > { %p1184_p7 = pneg %p1183_p10 }
 0x28b   : > { %p1189_p9 = pnand %p1188_p1, %p1184_p7 }
 0x28d   : > { %1192 = shalt.err (!%p1189_p9)
}
 0x28e   : > { %932 = dma.vmem_to_hbm [thread:$0]  (%p1441_p5), %s1524_s24, 64, %s1522_s3, %s625_s5   ;;  %v901_v37 = vpop.f32.mrf.mxu0  ;;  %v909_v38 = vpop.f32.mrf.mxu1 }
 0x28f   : > { %s403_s13 = scalar_lea.vmem [#allocation13], %s1502_s15  ;;  %s1577_s16 = scalar_lea.hbm %s1630_s8, %s1506_s26 }
 0x290   : > { %s677_s21 = sshll.u32 %s403_s13, 4  ;;  %v616_v39 = vpop.f32.mrf.mxu0  ;;  %s1297_s24 = smov [#allocation13]   ;;  %s678_s21 = int_to_ptr.vmem [resolvable:$true] %s677_s21 }
 0x291   : > { %v622_v40 = vpack.c.bf16 %v616_v39, %v616_v39  ;;  %s1193_s23 = scalar_lea.vmem %s678_s21, 64  ;;  %s1197_s15 = sshll.u32 %s1297_s24, 4  ;;  %s1198_s15 = int_to_ptr.vmem [resolvable:$false] %s1197_s15 }
 0x292   : > { %v916_v41 = vpop.f32.mrf.mxu0  ;;  %p1194_p13 = scmp.ne.s32.totalorder %s678_s21, %s1193_s23  ;;  %s1199_s3 = scalar_lea.vmem %s1198_s15, 128 }
 0x293   : > { %623 = vst.msk [vmem:[%s403_s13] sm:$0xf] %vm506_vm4, %v622_v40  ;;  %p1200_p6 = scmp.lt.s32.totalorder %s678_s21, %s1198_s15  ;;  %p1201_p12 = scmp.lt.s32.totalorder %s1199_s3, %s1193_s23 }
 0x294   : > { %v619_v42 = vpop.f32.mrf.mxu0  ;;  %p1195_p2 = pnand %p1194_p13, %p1441_p5 }
 0x295   : > { %p1202_p0 = por %p1201_p12, %p1200_p6 }
 0x296   : > { %p1196_p4 = pneg %p1195_p2 }
 0x298   : > { %p1203_p3 = pnand %p1202_p0, %p1196_p4 }
 0x29a   : > { %1206 = shalt.err (!%p1203_p3)
}
 0x29b   : > { %s1207_s26 = scalar_lea.hbm %s1577_s16, 64  ;;  %s1211_s17 = scalar_lea.hbm %s1630_s8, 128 }
 0x29c   : > { %p1208_p10 = scmp.ne.s32.totalorder %s1577_s16, %s1207_s26  ;;  %p1212_p11 = scmp.lt.s32.totalorder %s1577_s16, %s1630_s8 }
 0x29d   : > { %p1213_p1 = scmp.lt.s32.totalorder %s1211_s17, %s1207_s26 }
 0x29e   : > { %p1209_p7 = pnand %p1208_p10, %p1441_p5 }
 0x29f   : > { %p1214_p9 = por %p1213_p1, %p1212_p11 }
 0x2a0   : > { %p1210_p8 = pneg %p1209_p7 }
 0x2a2   : > { %p1215_p13 = pnand %p1214_p9, %p1210_p8 }
 0x2a4   : > { %1218 = shalt.err (!%p1215_p13)
}
 0x2a5   : > { %934 = dma.vmem_to_hbm [thread:$0]  (%p1441_p5), %s678_s21, 64, %s1577_s16, %s1528_s4   ;;  %v917_v43 = vpop.f32.mrf.mxu0 }
 0x2a6 PF: > { %s689_s11 = sand.u32 1, %s1265_s27   ;;  %p1654_p2 = scmp.ne.s32.totalorder %s1639_s14, 0 }
 0x2a7   : > { %p1655_p4 = scmp.ge.s32.totalorder %s1285_s10, 2  ;;  %s690_s13 = scalar_lea.sflag [#allocation4], %s689_s11 }
 0x2a9   : > { %p953_p6 = pnand %p1655_p4, %p1654_p2 }
 0x2ab   : > { %p954_p12 = pneg %p953_p6 }
 0x2ad   : > { %1256 = dma.done.wait (%p954_p12), %s690_s13, 64  }
 0x2ae   : > { %1258 = vsyncadd (%p954_p12), %s690_s13, 4294967232  ;;  %s1656_s22 = sadd.s32 4294967294, %s1285_s10  }
 0x2af   : > { %s698_s19 = sand.u32 1, %s1656_s22  }
 0x2b0   : > { %s699_s18 = scalar_lea.sflag [#allocation12], %s698_s19 }
 0x2b1   : > { %1260 = dma.done.wait (%p954_p12), %s699_s18, 128  }
 0x2b2   : > { %1262 = vsyncadd (%p954_p12), %s699_s18, 4294967168  ;;  %s30_s10 = sadd.s32 1, %s1285_s10   ;;  %s1657_s14 = sld [smem:[#allocation19_spill]] }
 0x2b3   : > { %p27_p5 = scmp.ge.s32.totalorder %s30_s10, 4   ;;  %s1658_s27 = smov %s1269_s28 }
 0x2b4   : > { %s1659_s28 = smov %s1273_s29  ;;  %s1660_s29 = smov %s1453_s25 }
 0x2b5   : > { %s1661_s30 = smov %s1281_s9  ;;  %29 = sbr.rel (!%p27_p5) target bundleno = 14 (0xe), region = 133 }
 0x2b8   : > { %s1662_s9 = smov %s1657_s14 }
 0x2ba   :  { %713 = vsyncpa [#allocation3], 1 }
 0x2bb   :  { %715 = vsyncpa [#allocation3 + $0x1], 1 }
 0x2bc   :  { %716 = vsyncpa [#allocation6], 1 }
 0x2bd   :  { %717 = vsyncpa [#allocation9], 1 }
 0x2be   :  { %718 = vsyncpa [#allocation4], 1 }
 0x2bf   :  { %720 = vsyncpa [#allocation4 + $0x1], 1 }
 0x2c0   :  { %721 = vsyncpa [#allocation12], 1 }
 0x2c1   :  { %723 = vsyncpa [#allocation12 + $0x1], 1 }

</bundles_post_ra>
